<compile_context>
chip_gen: v7x
topology: tpu7x:2x2x1
jax: 0.10.0
libtpu: 0.0.40
codegen_flags: <defaults>
</compile_context>

<pallas_src>
import jax
import jax.numpy as jnp
from jax import lax
from jax.experimental import pallas as pl
from jax.experimental.pallas import tpu as pltpu

# ---- static model dimensions (from the PyTorch spec) ------------------------
C = 62            # BatchNorm2d channels
H, W = 5, 1       # spatial dims so that C*H*W == 310 (fc1 in_features)
HW = H * W
F_IN = C * HW     # 310
HID1 = 256        # FeatureExtractor.fc1
FEAT = 128        # FeatureExtractor.fc2 output / EmotionClassifier input
HID2 = 64         # EmotionClassifier.fc1
NCLS = 3          # EmotionClassifier.fc2 (emotion classes)
EPS = 1e-5

N = 2             # example batch size for the demo in __main__

# One-hot channel-grouping matrix, built ONCE at module load:
#   flattened column j = c*HW + p belongs to channel c.
_FEAT_CHANNEL = jnp.arange(F_IN) // HW
_G = jax.nn.one_hot(_FEAT_CHANNEL, C, dtype=jnp.float32)      # (310, 62)
_GT = jnp.transpose(_G)                                        # (62, 310)


def dann_kernel(x_ref, g_ref, gt_ref, gamma_ref, beta_ref,
                w1_ref, b1_ref, w2_ref, b2_ref,
                w3_ref, b3_ref, w4_ref, b4_ref, o_ref):
    x = x_ref[...]                                            # (n, 310) f32

    # ---- BatchNorm2d (training-mode batch stats, biased variance) ----
    # One stacked MXU dot gives per-channel mean and E[x^2]; g_ref already
    # carries the 1/cnt factor folded in by the wrapper.
    col_sum = jnp.sum(x, axis=0, keepdims=True)               # (1, 310)
    col_sq = jnp.sum(x * x, axis=0, keepdims=True)            # (1, 310)
    stacked = jnp.concatenate([col_sum, col_sq], axis=0)      # (2, 310)
    stats = jnp.dot(stacked, g_ref[...],
                    preferred_element_type=jnp.float32)       # (2, 62) = [mean; E[x^2]]
    mean_c = stats[0:1, :]
    # E[x^2] - E[x]^2 in f32: fine for O(1)-scaled BN inputs; if inputs could
    # have mean >> std, switch back to the centered-sum variance path.
    var_c = stats[1:2, :] - mean_c * mean_c
    inv_std_c = lax.rsqrt(var_c + EPS)                        # (1, 62)
    scale_c = gamma_ref[...] * inv_std_c                      # (1, 62)
    shift_c = beta_ref[...] - mean_c * scale_c                # (1, 62)

    # Second (and last) stats dot: broadcast scale/shift back to 310 columns.
    ss = jnp.concatenate([scale_c, shift_c], axis=0)          # (2, 62)
    ss_cols = jnp.dot(ss, gt_ref[...],
                      preferred_element_type=jnp.float32)     # (2, 310)
    a = x * ss_cols[0:1, :] + ss_cols[1:2, :]                 # (n, 310) == flat(bn(x))

    # ---- FeatureExtractor MLP (bf16 MXU operands, f32 accumulation) ----
    h = jnp.dot(a.astype(jnp.bfloat16), w1_ref[...],
                preferred_element_type=jnp.float32) + b1_ref[...]
    h = jnp.maximum(h, 0.0)
    feat = jnp.dot(h.astype(jnp.bfloat16), w2_ref[...],
                   preferred_element_type=jnp.float32) + b2_ref[...]

    # ---- EmotionClassifier ----
    h2 = jnp.dot(feat.astype(jnp.bfloat16), w3_ref[...],
                 preferred_element_type=jnp.float32) + b3_ref[...]
    h2 = jnp.maximum(h2, 0.0)
    logits = jnp.dot(h2.astype(jnp.bfloat16), w4_ref[...],
                     preferred_element_type=jnp.float32) + b4_ref[...]

    # ---- LogSoftmax(dim=1) ----
    m = jnp.max(logits, axis=1, keepdims=True)
    z = logits - m
    lse = jnp.log(jnp.sum(jnp.exp(z), axis=1, keepdims=True))
    o_ref[...] = z - lse


def prepare_params(gamma, beta, w1, b1, w2, b2, w3, b3, w4, b4):
    """One-time prep: reshape biases, pre-transpose Linear weights, cast weights to bf16."""
    f32, bf16 = jnp.float32, jnp.bfloat16
    return (gamma.reshape(1, C).astype(f32),
            beta.reshape(1, C).astype(f32),
            jnp.asarray(w1).T.astype(bf16), b1.reshape(1, HID1).astype(f32),
            jnp.asarray(w2).T.astype(bf16), b2.reshape(1, FEAT).astype(f32),
            jnp.asarray(w3).T.astype(bf16), b3.reshape(1, HID2).astype(f32),
            jnp.asarray(w4).T.astype(bf16), b4.reshape(1, NCLS).astype(f32))


@jax.jit
def dann_forward(x_nchw, params):
    """x_nchw: (n, 62, H, W) float32 with H*W == 5. Returns (n, 3) log-probs."""
    n = x_nchw.shape[0]
    x2d = x_nchw.reshape(n, F_IN)                  # PyTorch Flatten (NCHW) order
    # cnt derived from the actual batch size (static under jit); folded into G
    # so the in-kernel stats dot directly yields mean and E[x^2]. This multiply
    # of two compile-time constants is folded by XLA.
    g_scaled = _G * (1.0 / float(n * HW))

    gamma, beta, w1t, b1, w2t, b2, w3t, b3, w4t, b4 = params

    flops = 2 * (2 * F_IN * C + 2 * C * F_IN
                 + n * (F_IN * HID1 + HID1 * FEAT + FEAT * HID2 + HID2 * NCLS))
    bytes_accessed = ((n * F_IN + 2 * F_IN * C + 2 * C
                       + HID1 + FEAT + HID2 + NCLS + n * NCLS) * 4
                      + (F_IN * HID1 + HID1 * FEAT + FEAT * HID2 + HID2 * NCLS) * 2)

    vmem = pl.BlockSpec(memory_space=pltpu.MemorySpace.VMEM)
    return pl.pallas_call(
        dann_kernel,
        out_shape=jax.ShapeDtypeStruct((n, NCLS), jnp.float32),
        in_specs=[vmem] * 13,
        out_specs=vmem,
        cost_estimate=pl.CostEstimate(
            flops=int(flops),
            transcendentals=int(n * (NCLS + 1) + C),
            bytes_accessed=int(bytes_accessed)),
    )(x2d, g_scaled, _GT, gamma, beta, w1t, b1, w2t, b2, w3t, b3, w4t, b4)


def reference(x_nchw, gamma, beta, w1, b1, w2, b2, w3, b3, w4, b4):
    """Pure-JAX f32 reference matching torch training-mode BatchNorm2d + the MLPs."""
    mean = jnp.mean(x_nchw, axis=(0, 2, 3), keepdims=True)
    var = jnp.mean((x_nchw - mean) ** 2, axis=(0, 2, 3), keepdims=True)
    xn = (x_nchw - mean) / jnp.sqrt(var + EPS)
    xn = xn * gamma.reshape(1, C, 1, 1) + beta.reshape(1, C, 1, 1)
    a = xn.reshape(x_nchw.shape[0], -1)
    h = jnp.maximum(a @ w1.T + b1, 0.0)
    feat = h @ w2.T + b2
    h2 = jnp.maximum(feat @ w3.T + b3, 0.0)
    logits = h2 @ w4.T + b4
    return jax.nn.log_softmax(logits, axis=1)


if __name__ == "__main__":
    key = jax.random.PRNGKey(0)
    ks = jax.random.split(key, 11)

    x = jax.random.normal(ks[0], (N, C, H, W), dtype=jnp.float32)
    gamma = 1.0 + 0.1 * jax.random.normal(ks[1], (C,), dtype=jnp.float32)
    beta = 0.1 * jax.random.normal(ks[2], (C,), dtype=jnp.float32)
    w1 = jax.random.normal(ks[3], (HID1, F_IN), dtype=jnp.float32) / jnp.sqrt(float(F_IN))
    b1 = 0.01 * jax.random.normal(ks[4], (HID1,), dtype=jnp.float32)
    w2 = jax.random.normal(ks[5], (FEAT, HID1), dtype=jnp.float32) / jnp.sqrt(float(HID1))
    b2 = 0.01 * jax.random.normal(ks[6], (FEAT,), dtype=jnp.float32)
    w3 = jax.random.normal(ks[7], (HID2, FEAT), dtype=jnp.float32) / jnp.sqrt(float(FEAT))
    b3 = 0.01 * jax.random.normal(ks[8], (HID2,), dtype=jnp.float32)
    w4 = jax.random.normal(ks[9], (NCLS, HID2), dtype=jnp.float32) / jnp.sqrt(float(HID2))
    b4 = 0.01 * jax.random.normal(ks[10], (NCLS,), dtype=jnp.float32)

    params = prepare_params(gamma, beta, w1, b1, w2, b2, w3, b3, w4, b4)

    out = dann_forward(x, params)
    out = jax.block_until_ready(out)

    ref = reference(x, gamma, beta, w1, b1, w2, b2, w3, b3, w4, b4)
    assert out.shape == (N, NCLS)
    # bf16 matmul operands (f32 accumulate) => relax tolerance vs pure-f32 reference.
    assert jnp.allclose(out, ref, atol=5e-2, rtol=5e-2), "mismatch vs reference"
    # sanity: rows are valid log-probabilities
    assert jnp.allclose(jnp.sum(jnp.exp(out), axis=1), 1.0, atol=1e-3)

    print("KERNEL_OK")
</pallas_src>

<mosaic_0001>
module attributes {stable_mosaic.version = 11 : i64} {
  func.func @dann_kernel(%arg0: memref<2x310xf32, #tpu.memory_space<vmem>>, %arg1: memref<310x62xf32, #tpu.memory_space<vmem>>, %arg2: memref<62x310xf32, #tpu.memory_space<vmem>>, %arg3: memref<1x62xf32, #tpu.memory_space<vmem>>, %arg4: memref<1x62xf32, #tpu.memory_space<vmem>>, %arg5: memref<310x256xbf16, #tpu.memory_space<vmem>>, %arg6: memref<1x256xf32, #tpu.memory_space<vmem>>, %arg7: memref<256x128xbf16, #tpu.memory_space<vmem>>, %arg8: memref<1x128xf32, #tpu.memory_space<vmem>>, %arg9: memref<128x64xbf16, #tpu.memory_space<vmem>>, %arg10: memref<1x64xf32, #tpu.memory_space<vmem>>, %arg11: memref<64x3xbf16, #tpu.memory_space<vmem>>, %arg12: memref<1x3xf32, #tpu.memory_space<vmem>>, %arg13: memref<2x3xf32, #tpu.memory_space<vmem>>) attributes {dimension_semantics = [], scalar_prefetch = 0 : i64, scratch_operands = 0 : i64, tpu.core_type = #tpu.core_type<tc>} {
    %c0 = arith.constant 0 : index
    %c0_0 = arith.constant 0 : index
    %0 = vector.load %arg0[%c0, %c0_0] : memref<2x310xf32, #tpu.memory_space<vmem>>, vector<2x310xf32>
    %cst = arith.constant dense<0.000000e+00> : vector<310xf32>
    %1 = vector.multi_reduction <add>, %0, %cst [0] : vector<2x310xf32> to vector<310xf32>
    %2 = vector.shape_cast %1 : vector<310xf32> to vector<1x310xf32>
    %3 = arith.mulf %0, %0 : vector<2x310xf32>
    %cst_1 = arith.constant dense<0.000000e+00> : vector<310xf32>
    %4 = vector.multi_reduction <add>, %3, %cst_1 [0] : vector<2x310xf32> to vector<310xf32>
    %5 = vector.shape_cast %4 : vector<310xf32> to vector<1x310xf32>
    %6 = tpu.concatenate %2, %5 in 0 : vector<1x310xf32>, vector<1x310xf32> -> vector<2x310xf32>
    %c0_2 = arith.constant 0 : index
    %c0_3 = arith.constant 0 : index
    %7 = vector.load %arg1[%c0_2, %c0_3] : memref<310x62xf32, #tpu.memory_space<vmem>>, vector<310x62xf32>
    %cst_4 = arith.constant dense<0.000000e+00> : vector<2x62xf32>
    %8 = tpu.matmul %6, %7, %cst_4 {dimension_numbers = #tpu.dot_dimension_numbers<[1], [0], [0], [1], [0, 0, 1, 1], [], []>} : vector<2x310xf32>, vector<310x62xf32>, vector<2x62xf32> -> vector<2x62xf32>
    %9 = vector.extract_strided_slice %8 {offsets = [0, 0], sizes = [1, 62], strides = [1, 1]} : vector<2x62xf32> to vector<1x62xf32>
    %10 = vector.extract_strided_slice %8 {offsets = [1, 0], sizes = [1, 62], strides = [1, 1]} : vector<2x62xf32> to vector<1x62xf32>
    %11 = arith.mulf %9, %9 : vector<1x62xf32>
    %12 = arith.subf %10, %11 : vector<1x62xf32>
    %cst_5 = arith.constant 9.99999974E-6 : f32
    %13 = vector.broadcast %cst_5 : f32 to vector<1x62xf32>
    %14 = arith.addf %12, %13 : vector<1x62xf32>
    %15 = math.rsqrt %14 : vector<1x62xf32>
    %c0_6 = arith.constant 0 : index
    %c0_7 = arith.constant 0 : index
    %16 = vector.load %arg3[%c0_6, %c0_7] : memref<1x62xf32, #tpu.memory_space<vmem>>, vector<1x62xf32>
    %17 = arith.mulf %16, %15 : vector<1x62xf32>
    %c0_8 = arith.constant 0 : index
    %c0_9 = arith.constant 0 : index
    %18 = vector.load %arg4[%c0_8, %c0_9] : memref<1x62xf32, #tpu.memory_space<vmem>>, vector<1x62xf32>
    %19 = arith.mulf %9, %17 : vector<1x62xf32>
    %20 = arith.subf %18, %19 : vector<1x62xf32>
    %21 = tpu.concatenate %17, %20 in 0 : vector<1x62xf32>, vector<1x62xf32> -> vector<2x62xf32>
    %c0_10 = arith.constant 0 : index
    %c0_11 = arith.constant 0 : index
    %22 = vector.load %arg2[%c0_10, %c0_11] : memref<62x310xf32, #tpu.memory_space<vmem>>, vector<62x310xf32>
    %cst_12 = arith.constant dense<0.000000e+00> : vector<2x310xf32>
    %23 = tpu.matmul %21, %22, %cst_12 {dimension_numbers = #tpu.dot_dimension_numbers<[1], [0], [0], [1], [0, 0, 1, 1], [], []>} : vector<2x62xf32>, vector<62x310xf32>, vector<2x310xf32> -> vector<2x310xf32>
    %24 = vector.extract_strided_slice %23 {offsets = [0, 0], sizes = [1, 310], strides = [1, 1]} : vector<2x310xf32> to vector<1x310xf32>
    %25 = vector.broadcast %24 : vector<1x310xf32> to vector<2x310xf32>
    %26 = arith.mulf %0, %25 : vector<2x310xf32>
    %27 = vector.extract_strided_slice %23 {offsets = [1, 0], sizes = [1, 310], strides = [1, 1]} : vector<2x310xf32> to vector<1x310xf32>
    %28 = vector.broadcast %27 : vector<1x310xf32> to vector<2x310xf32>
    %29 = arith.addf %26, %28 : vector<2x310xf32>
    %30 = arith.truncf %29 : vector<2x310xf32> to vector<2x310xbf16>
    %c0_13 = arith.constant 0 : index
    %c0_14 = arith.constant 0 : index
    %31 = vector.load %arg5[%c0_13, %c0_14] : memref<310x256xbf16, #tpu.memory_space<vmem>>, vector<310x256xbf16>
    %cst_15 = arith.constant dense<0.000000e+00> : vector<2x256xf32>
    %32 = tpu.matmul %30, %31, %cst_15 {dimension_numbers = #tpu.dot_dimension_numbers<[1], [0], [0], [1], [0, 0, 1, 1], [], []>} : vector<2x310xbf16>, vector<310x256xbf16>, vector<2x256xf32> -> vector<2x256xf32>
    %c0_16 = arith.constant 0 : index
    %c0_17 = arith.constant 0 : index
    %33 = vector.load %arg6[%c0_16, %c0_17] : memref<1x256xf32, #tpu.memory_space<vmem>>, vector<1x256xf32>
    %34 = vector.broadcast %33 : vector<1x256xf32> to vector<2x256xf32>
    %35 = arith.addf %32, %34 : vector<2x256xf32>
    %cst_18 = arith.constant 0.000000e+00 : f32
    %36 = vector.broadcast %cst_18 : f32 to vector<2x256xf32>
    %37 = arith.maximumf %35, %36 : vector<2x256xf32>
    %38 = arith.truncf %37 : vector<2x256xf32> to vector<2x256xbf16>
    %c0_19 = arith.constant 0 : index
    %c0_20 = arith.constant 0 : index
    %39 = vector.load %arg7[%c0_19, %c0_20] : memref<256x128xbf16, #tpu.memory_space<vmem>>, vector<256x128xbf16>
    %cst_21 = arith.constant dense<0.000000e+00> : vector<2x128xf32>
    %40 = tpu.matmul %38, %39, %cst_21 {dimension_numbers = #tpu.dot_dimension_numbers<[1], [0], [0], [1], [0, 0, 1, 1], [], []>} : vector<2x256xbf16>, vector<256x128xbf16>, vector<2x128xf32> -> vector<2x128xf32>
    %c0_22 = arith.constant 0 : index
    %c0_23 = arith.constant 0 : index
    %41 = vector.load %arg8[%c0_22, %c0_23] : memref<1x128xf32, #tpu.memory_space<vmem>>, vector<1x128xf32>
    %42 = vector.broadcast %41 : vector<1x128xf32> to vector<2x128xf32>
    %43 = arith.addf %40, %42 : vector<2x128xf32>
    %44 = arith.truncf %43 : vector<2x128xf32> to vector<2x128xbf16>
    %c0_24 = arith.constant 0 : index
    %c0_25 = arith.constant 0 : index
    %45 = vector.load %arg9[%c0_24, %c0_25] : memref<128x64xbf16, #tpu.memory_space<vmem>>, vector<128x64xbf16>
    %cst_26 = arith.constant dense<0.000000e+00> : vector<2x64xf32>
    %46 = tpu.matmul %44, %45, %cst_26 {dimension_numbers = #tpu.dot_dimension_numbers<[1], [0], [0], [1], [0, 0, 1, 1], [], []>} : vector<2x128xbf16>, vector<128x64xbf16>, vector<2x64xf32> -> vector<2x64xf32>
    %c0_27 = arith.constant 0 : index
    %c0_28 = arith.constant 0 : index
    %47 = vector.load %arg10[%c0_27, %c0_28] : memref<1x64xf32, #tpu.memory_space<vmem>>, vector<1x64xf32>
    %48 = vector.broadcast %47 : vector<1x64xf32> to vector<2x64xf32>
    %49 = arith.addf %46, %48 : vector<2x64xf32>
    %cst_29 = arith.constant 0.000000e+00 : f32
    %50 = vector.broadcast %cst_29 : f32 to vector<2x64xf32>
    %51 = arith.maximumf %49, %50 : vector<2x64xf32>
    %52 = arith.truncf %51 : vector<2x64xf32> to vector<2x64xbf16>
    %c0_30 = arith.constant 0 : index
    %c0_31 = arith.constant 0 : index
    %53 = vector.load %arg11[%c0_30, %c0_31] : memref<64x3xbf16, #tpu.memory_space<vmem>>, vector<64x3xbf16>
    %cst_32 = arith.constant dense<0.000000e+00> : vector<2x3xf32>
    %54 = tpu.matmul %52, %53, %cst_32 {dimension_numbers = #tpu.dot_dimension_numbers<[1], [0], [0], [1], [0, 0, 1, 1], [], []>} : vector<2x64xbf16>, vector<64x3xbf16>, vector<2x3xf32> -> vector<2x3xf32>
    %c0_33 = arith.constant 0 : index
    %c0_34 = arith.constant 0 : index
    %55 = vector.load %arg12[%c0_33, %c0_34] : memref<1x3xf32, #tpu.memory_space<vmem>>, vector<1x3xf32>
    %56 = vector.broadcast %55 : vector<1x3xf32> to vector<2x3xf32>
    %57 = arith.addf %54, %56 : vector<2x3xf32>
    %cst_35 = arith.constant dense<0xFF800000> : vector<2xf32>
    %58 = vector.multi_reduction <maximumf>, %57, %cst_35 [1] : vector<2x3xf32> to vector<2xf32>
    %59 = vector.shape_cast %58 : vector<2xf32> to vector<2x1xf32>
    %60 = vector.broadcast %59 : vector<2x1xf32> to vector<2x3xf32>
    %61 = arith.subf %57, %60 : vector<2x3xf32>
    %62 = math.exp %61 : vector<2x3xf32>
    %cst_36 = arith.constant dense<0.000000e+00> : vector<2xf32>
    %63 = vector.multi_reduction <add>, %62, %cst_36 [1] : vector<2x3xf32> to vector<2xf32>
    %64 = vector.shape_cast %63 : vector<2xf32> to vector<2x1xf32>
    %65 = math.log %64 : vector<2x1xf32>
    %66 = vector.broadcast %65 : vector<2x1xf32> to vector<2x3xf32>
    %67 = arith.subf %61, %66 : vector<2x3xf32>
    %c0_37 = arith.constant 0 : index
    %c0_38 = arith.constant 0 : index
    %68 = vector.load %arg13[%c0_37, %c0_38] : memref<2x3xf32, #tpu.memory_space<vmem>>, vector<2x3xf32>
    tpu.vector_store %arg13[%c0_37, %c0_38], %67 {strides = array<i32>} : memref<2x3xf32, #tpu.memory_space<vmem>>, vector<2x3xf32>,
    return
  }
}

</mosaic_0001>

<bundles_post_ra>
// kernel: dann_forward.1
= control target key start
LH: loop header
LB: loop body
LE: loop exit
PB: predicated region body
PF: predicated region fallthrough
CT: control target
= control target key end

     0   :  { %18 = vsyncpa [#allocation3], 0  ;;  %s2337_s0 = inlined_call_operand.vmem [shape: f32[2,310], index: 0, kind: input, shape index: {}]   ;;  %s2338_s1 = inlined_call_operand.hbm [shape: f32[310,62], index: 1, kind: input, shape index: {}]   ;;  %s2339_s2 = inlined_call_operand.hbm [shape: f32[62,310], index: 2, kind: input, shape index: {}]   ;;  %s2340_s3 = inlined_call_operand.vmem [shape: f32[1,62], index: 3, kind: input, shape index: {}]   ;;  %s2341_s4 = inlined_call_operand.vmem [shape: f32[1,62], index: 4, kind: input, shape index: {}]   ;;  %s2342_s5 = inlined_call_operand.vmem [shape: bf16[310,256], index: 5, kind: input, shape index: {}]   ;;  %s2343_s6 = inlined_call_operand.vmem [shape: f32[1,256], index: 6, kind: input, shape index: {}]   ;;  %s2344_s7 = inlined_call_operand.hbm [shape: bf16[256,128], index: 7, kind: input, shape index: {}]   ;;  %s2345_s8 = inlined_call_operand.vmem [shape: f32[1,128], index: 8, kind: input, shape index: {}]   ;;  %s2346_s9 = inlined_call_operand.vmem [shape: bf16[128,64], index: 9, kind: input, shape index: {}]   ;;  %s2347_s10 = inlined_call_operand.vmem [shape: f32[1,64], index: 10, kind: input, shape index: {}]   ;;  %s2348_s11 = inlined_call_operand.vmem [shape: bf16[64,3], index: 11, kind: input, shape index: {}]   ;;  %s2349_s12 = inlined_call_operand.vmem [shape: f32[1,3], index: 12, kind: input, shape index: {}]   ;;  %s2350_s13 = inlined_call_operand.hbm [shape: f32[2,3], index: 13, kind: output, shape index: {}]  }
   0x1   :  { %19 = vsyncpa [#allocation6], 0 }
   0x2   :  { %20 = vsyncpa [#allocation4], 0  ;;  %s1931_s25 = smov [#allocation5]   ;;  %s1837_s29 = scalar_lea.hbm %s2339_s2, 3072 }
   0x3   :  { %s40_s26 = sshll.u32 %s1931_s25, 4  ;;  %p1838_p0 = scmp.ne.s32.totalorder %s2339_s2, %s1837_s29  ;;  %s41_s26 = int_to_ptr.vmem [resolvable:$true] %s40_s26 }
   0x4   :  { %p1841_p1 = scmp.lt.u32.totalorder %s1837_s29, %s2339_s2 }
   0x6   :  { %p1843_p2 = pnand %p1841_p1, %p1838_p0 }
   0x8   :  { %1846 = shalt.err (!%p1843_p2)
}
   0x9   :  { %s1847_s17 = scalar_lea.vmem %s41_s26, 3072  ;;  %p1852_p4 = scmp.lt.s32.totalorder %s41_s26, %s41_s26 }
   0xa   :  { %p1848_p3 = scmp.ne.s32.totalorder %s41_s26, %s1847_s17  ;;  %p1853_p5 = scmp.lt.s32.totalorder %s1847_s17, %s1847_s17 }
   0xc   :  { %p1854_p6 = por %p1853_p5, %p1852_p4 }
   0xe   :  { %p1855_p7 = pnand %p1854_p6, %p1848_p3 }
  0x10   :  { %1858 = shalt.err (!%p1855_p7)
}
  0x11   :  { %s1932_s18 = smov 384   ;;  %s1933_s19 = smov 24  }
  0x12   :  { %46 = dma.hbm_to_vmem [thread:$0]  %s2339_s2, 3072, %s41_s26, [#allocation6], %s1932_s18, %s1932_s18, %s1933_s19  }
  0x13   :  { %s1934_s22 = smov [#allocation2]   ;;  %s1859_s27 = scalar_lea.hbm %s2338_s1, 4992 }
  0x14   :  { %s28_s23 = sshll.u32 %s1934_s22, 4  ;;  %p1860_p8 = scmp.ne.s32.totalorder %s2338_s1, %s1859_s27  ;;  %s29_s23 = int_to_ptr.vmem [resolvable:$true] %s28_s23 }
  0x15   :  { %p1863_p9 = scmp.lt.u32.totalorder %s1859_s27, %s2338_s1 }
  0x17   :  { %p1865_p10 = pnand %p1863_p9, %p1860_p8 }
  0x19   :  { %1868 = shalt.err (!%p1865_p10)
}
  0x1a   :  { %s1869_s15 = scalar_lea.vmem %s29_s23, 4992  ;;  %p1874_p12 = scmp.lt.s32.totalorder %s29_s23, %s29_s23 }
  0x1b   :  { %p1870_p11 = scmp.ne.s32.totalorder %s29_s23, %s1869_s15  ;;  %p1875_p13 = scmp.lt.s32.totalorder %s1869_s15, %s1869_s15 }
  0x1d   :  { %p1876_p0 = por %p1875_p13, %p1874_p12 }
  0x1f   :  { %p1877_p1 = pnand %p1876_p0, %p1870_p11 }
  0x21   :  { %1880 = shalt.err (!%p1877_p1)
}
  0x22   :  { %s1935_s2 = smov 128   ;;  %s1936_s26 = smov 8  }
  0x23   :  { %34 = dma.hbm_to_vmem [thread:$0]  %s2338_s1, 4992, %s29_s23, [#allocation3], %s1935_s2, %s1935_s2, %s1936_s26  }
  0x24   :  { %s1937_s18 = smov [#allocation7]   ;;  %s1881_s22 = scalar_lea.hbm %s2344_s7, 2048 }
  0x25   :  { %s60_s19 = sshll.u32 %s1937_s18, 4  ;;  %p1882_p2 = scmp.ne.s32.totalorder %s2344_s7, %s1881_s22  ;;  %s61_s19 = int_to_ptr.vmem [resolvable:$true] %s60_s19 }
  0x26   :  { %p1885_p3 = scmp.lt.u32.totalorder %s1881_s22, %s2344_s7 }
  0x28   :  { %p1887_p4 = pnand %p1885_p3, %p1882_p2 }
  0x2a   :  { %1890 = shalt.err (!%p1887_p4)
}
  0x2b   :  { %s1891_s29 = scalar_lea.vmem %s61_s19, 2048  ;;  %p1896_p6 = scmp.lt.s32.totalorder %s61_s19, %s61_s19 }
  0x2c   :  { %p1892_p5 = scmp.ne.s32.totalorder %s61_s19, %s1891_s29  ;;  %p1897_p7 = scmp.lt.s32.totalorder %s1891_s29, %s1891_s29 }
  0x2e   :  { %p1898_p8 = por %p1897_p7, %p1896_p6 }
  0x30   :  { %p1899_p9 = pnand %p1898_p8, %p1892_p5 }
  0x32   :  { %1902 = shalt.err (!%p1899_p9)
}
  0x33   :  { %s1938_s1 = smov 64   ;;  %s1939_s23 = smov 4  }
  0x34   :  { %66 = dma.hbm_to_vmem [thread:$0]  %s2344_s7, 2048, %s61_s19, [#allocation6], %s1938_s1, %s1938_s1, %s1939_s23  }
  0x35   :  { %1925 = dma.done.wait [#allocation3], 4992  }
  0x36   :  { %1926 = vsyncadd [#allocation3], 4294962304 }
  0x37   :  { %1927 = dma.done.wait [#allocation6], 5120  }
  0x38   :  { %1928 = vsyncadd [#allocation6], 4294962176  ;;  %v1940_v0 = vmov 0.0|0.0   ;;  %vm1941_vm0 = vmmov 0   ;;  %v1942_v1 = vmov 0.0   ;;  %v193_v2 = vld [vmem:[#allocation2 + $0x80] sm:$0xff]  ;;  %v93_v11 = vlaneseq }
  0x39   :  { %1680 = vmatprep.subr.bf16.mxu1 %v1940_v0  ;;  %1594 = vmatprep.mubr.msk.f32.mxu1 %vm1941_vm0, %v1942_v1  ;;  %v194_v3 = vld [vmem:[#allocation2 + $0x88] sm:$0xff]  ;;  %v177_v4 = vld [vmem:[#allocation2] sm:$0xff]  ;;  %v195_v7 = vld [vmem:[#allocation2 + $0x90] sm:$0xff]  ;;  %v1943_v9 = vmov 1983009808   ;;  %vm108_vm1 = vcmask 1041408  }
  0x3a   :  { %v1648_v5 = vpack.c.bf16 %v194_v3, %v193_v2  ;;  %v178_v6 = vld [vmem:[#allocation2 + $0x8] sm:$0xff]  ;;  %v196_v8 = vld [vmem:[#allocation2 + $0x98] sm:$0xff]  ;;  %v91_v10 = vunpack.c.l.s4 %v1943_v9  ;;  %v179_v14 = vld [vmem:[#allocation2 + $0x10] sm:$0xff]  ;;  %v2057_v23 = vshrl.u32 %v93_v11, 7  ;;  %vm123_vm2 = vcmask 435200  }
  0x3b   :  { %v1650_v12 = vpack.c.bf16 %v178_v6, %v177_v4  ;;  %v1652_v13 = vpack.c.bf16 %v196_v8, %v195_v7  ;;  %v180_v15 = vld [vmem:[#allocation2 + $0x18] sm:$0xff]  ;;  %v197_v16 = vld [vmem:[#allocation2 + $0xa0] sm:$0xff]  ;;  %v198_v17 = vld [vmem:[#allocation2 + $0xa8] sm:$0xff]  ;;  %vm220_vm3 = vcmask 1045504   ;;  %vm173_vm4 = vcmask 1040384  }
  0x3c   :  { %1649 = vmatprep.subr.bf16.mxu0 %v1648_v5  ;;  %v1654_v18 = vpack.c.bf16 %v180_v15, %v179_v14  ;;  %v1656_v19 = vpack.c.bf16 %v198_v17, %v197_v16  ;;  %v181_v20 = vld [vmem:[#allocation2 + $0x20] sm:$0xff]  ;;  %v182_v21 = vld [vmem:[#allocation2 + $0x28] sm:$0xff]  ;;  %v92_v22 = vunpack.c.0.s8 %v91_v10  ;;  %v199_v24 = vld [vmem:[#allocation2 + $0xb0] sm:$0xff]  ;;  %vm216_vm5 = vcmask 441344  }
  0x3d   :  { %1651 = vmatpush3.bf16.msra.mxu0 %v1650_v12  ;;  %v200_v25 = vld [vmem:[#allocation2 + $0xb8] sm:$0xff]  ;;  %v1658_v26 = vpack.c.bf16 %v182_v21, %v181_v20  ;;  %v209_v27 = vld [vmem:[#allocation2 + $0x100] sm:$0xff]  ;;  %v210_v28 = vld [vmem:[#allocation2 + $0x108] sm:$0xff]  ;;  %vm1944_vm6 = vmmov 1   ;;  %vm424_vm8 = vcmask 506880   ;;  %vm916_vm9 = vcmask 1042432  }
  0x3e   :  { %1653 = vmatprep.subr.bf16.mxu0 %v1652_v13  ;;  %v1660_v29 = vpack.c.bf16 %v200_v25, %v199_v24  ;;  %v183_v30 = vld [vmem:[#allocation2 + $0x30] sm:$0xff]  ;;  %v184_v31 = vld [vmem:[#allocation2 + $0x38] sm:$0xff]  ;;  %v201_v32 = vld [vmem:[#allocation2 + $0xc0] sm:$0xff]  ;;  %v1681_v33 = vpack.c.bf16 %v210_v28, %v209_v27  ;;  %v2060_v34 = vsub.s32 %v92_v22, %v2057_v23  ;;  %vm1337_vm10 = vcmask 523264  }
  0x3f   :  { %v202_v35 = vld [vmem:[#allocation2 + $0xc8] sm:$0xff]  ;;  %v211_v36 = vld [vmem:[#allocation2 + $0x110] sm:$0xff]  ;;  %v212_v37 = vld [vmem:[#allocation2 + $0x118] sm:$0xff]  ;;  %v1662_v42 = vpack.c.bf16 %v184_v31, %v183_v30  ;;  %vm1381_vm11 = vcmask 17408  }
  0x40   :  { %v185_v38 = vld [vmem:[#allocation2 + $0x40] sm:$0xff]  ;;  %v186_v39 = vld [vmem:[#allocation2 + $0x48] sm:$0xff]  ;;  %v203_v40 = vld [vmem:[#allocation2 + $0xd0] sm:$0xff]  ;;  %1682 = vmatpush3.bf16.msra.mxu1 %v1681_v33  ;;  %v1684_v41 = vpack.c.bf16 %v212_v37, %v211_v36  ;;  %v1664_v46 = vpack.c.bf16 %v202_v35, %v201_v32 }
  0x41   :  { %1655 = vmatpush3.bf16.msra.mxu0 %v1654_v18  ;;  %1683 = vmatprep.subr.bf16.mxu1 %v1940_v0  ;;  %v213_v43 = vld [vmem:[#allocation2 + $0x120] sm:$0xff]  ;;  %v214_v44 = vld [vmem:[#allocation2 + $0x128] sm:$0xff]  ;;  %v204_v47 = vld [vmem:[#allocation2 + $0xd8] sm:$0xff]  ;;  %v1666_v58 = vpack.c.bf16 %v186_v39, %v185_v38 }
  0x42   :  { %1657 = vmatprep.subr.bf16.mxu0 %v1656_v19  ;;  %v2066_v45 = vld [vmem:[%s2337_s0] sm:$0x3f]  ;;  %v187_v51 = vld [vmem:[#allocation2 + $0x50] sm:$0xff]  ;;  %v188_v52 = vld [vmem:[#allocation2 + $0x58] sm:$0xff]  ;;  %v1687_v53 = vpack.c.bf16 %v214_v44, %v213_v43  ;;  %v1668_v59 = vpack.c.bf16 %v204_v47, %v203_v40 }
  0x43   :  { %v96_v48 = vrot.slane %v2066_v45, %v2060_v34  ;;  %v131_v49 = vmul.f32 %v2066_v45, %v2066_v45  ;;  %v89_v50 = vcombine.high %v2066_v45, %v2066_v45  ;;  %v205_v60 = vld [vmem:[#allocation2 + $0xe0] sm:$0xff]  ;;  %v206_v61 = vld [vmem:[#allocation2 + $0xe8] sm:$0xff]  ;;  %v215_v11 = vld [vmem:[#allocation2 + $0x130] sm:$0x3f]  ;;  %v1670_v13 = vpack.c.bf16 %v188_v52, %v187_v51 }
  0x44   :  { %1685 = vmatpush3.bf16.msra.mxu1 %v1684_v41  ;;  %v189_v6 = vld [vmem:[#allocation2 + $0x60] sm:$0xff]  ;;  %v190_v7 = vld [vmem:[#allocation2 + $0x68] sm:$0xff]  ;;  %v207_v16 = vld [vmem:[#allocation2 + $0xf0] sm:$0xff]  ;;  %v1672_v22 = vpack.c.bf16 %v206_v61, %v205_v60 }
  0x45   :  { %1659 = vmatpush3.bf16.msra.mxu0 %v1658_v26  ;;  %v104_v54 = vcombine.high %v96_v48, %v96_v48  ;;  %v140_v55 = vrot.slane %v131_v49, %v2060_v34  ;;  %v109_v56 = vsel %vm108_vm1, %v96_v48, 0.0  ;;  %v103_v57 = vrot.slane %v89_v50, %v2060_v34  ;;  %1686 = vmatprep.subr.bf16.mxu1 %v1940_v0  ;;  %v208_v17 = vld [vmem:[#allocation2 + $0xf8] sm:$0xff]  ;;  %v191_v26 = vld [vmem:[#allocation2 + $0x70] sm:$0xff]  ;;  %vm2092_vm7 = vmpackc.low %vm220_vm3, %vm1944_vm6 }
  0x46   :  { %1661 = vmatprep.subr.bf16.mxu0 %v1660_v29  ;;  %v110_v62 = vrot.slane %v109_v56, 4  ;;  %v133_v63 = vcombine.high %v131_v49, %v131_v49  ;;  %v192_v27 = vld [vmem:[#allocation2 + $0x78] sm:$0xff]  ;;  %v1674_v32 = vpack.c.bf16 %v190_v7, %v189_v6  ;;  %v1676_v40 = vpack.c.bf16 %v208_v17, %v207_v16  ;;  %v407_v6 = vld [vmem:[#allocation5 + $0x38] sm:$0xff]  ;;  %v410_v7 = vld [vmem:[#allocation5 + $0x50] sm:$0xff] }
  0x47   :  { %v116_v2 = vsel %vm108_vm1, %v104_v54, 0.0  ;;  %v148_v3 = vcombine.high %v140_v55, %v140_v55  ;;  %v152_v4 = vsel %vm108_vm1, %v140_v55, 0.0  ;;  %v124_v5 = vsel %vm123_vm2, %v103_v57, 0.0  ;;  %v415_v16 = vld [vmem:[#allocation5 + $0x78] sm:$0xff] }
  0x48   :  { %v117_v8 = vrot.slane %v116_v2, 4  ;;  %v111_v9 = vadd.f32 %v110_v62, %v109_v56  ;;  %v153_v10 = vrot.slane %v152_v4, 4  ;;  %v125_v12 = vrot.slane %v124_v5, 4  ;;  %1688 = vmatpush3.bf16.msra.mxu1 %v1687_v53  ;;  %v401_v62 = vld [vmem:[#allocation5 + $0x8] sm:$0xff] }
  0x49   :  { %1663 = vmatpush3.bf16.msra.mxu0 %v1662_v42  ;;  %v159_v14 = vsel %vm108_vm1, %v148_v3, 0.0  ;;  %v147_v15 = vrot.slane %v133_v63, %v2060_v34  ;;  %1592 = vmatprep.subr.mxu1 %v1942_v1  ;;  %v1678_v47 = vpack.c.bf16 %v192_v27, %v191_v26  ;;  %v404_v63 = vld [vmem:[#allocation5 + $0x20] sm:$0xff]  ;;  %v1744_v26 = vld [vmem:[%s2342_s5] ss:$8 sps:$4 sm:$0xff]   ;;  %v1746_v27 = vld [vmem:[%s2342_s5 + $0x4] ss:$8 sps:$4 sm:$0xff]  }
  0x4a   :  { %1665 = vmatprep.subr.bf16.mxu0 %v1664_v46  ;;  %v118_v18 = vadd.f32 %v117_v8, %v116_v2  ;;  %v160_v19 = vrot.slane %v159_v14, 4  ;;  %v112_v20 = vrot.slane %v111_v9, 2  ;;  %v154_v21 = vadd.f32 %v153_v10, %v152_v4  ;;  %v400_v3 = vld [vmem:[#allocation5] sm:$0xff]  ;;  %v403_v4 = vld [vmem:[#allocation5 + $0x18] sm:$0xff]  ;;  %v409_v10 = vld [vmem:[#allocation5 + $0x48] sm:$0xff] }
  0x4b   :  { %v126_v24 = vadd.f32 %v125_v12, %v124_v5  ;;  %v166_v25 = vsel %vm123_vm2, %v147_v15, 0.0  ;;  %v1689_v2 = vpack.c.bf16 %v404_v63, %v401_v62  ;;  %v1691_v5 = vpack.c.bf16 %v403_v4, %v400_v3  ;;  %v413_v12 = vld [vmem:[#allocation5 + $0x68] sm:$0xff]  ;;  %v412_v15 = vld [vmem:[#allocation5 + $0x60] sm:$0xff] }
  0x4c   :  { %v119_v28 = vrot.slane %v118_v18, 2  ;;  %v161_v29 = vadd.f32 %v160_v19, %v159_v14  ;;  %v113_v30 = vadd.f32 %v112_v20, %v111_v9  ;;  %v155_v31 = vrot.slane %v154_v21, 2  ;;  %1593 = vmatpush3.msk.msra.mxu1 %vm220_vm3, %v215_v11  ;;  %v406_v9 = vld [vmem:[#allocation5 + $0x30] sm:$0xff] }
  0x4d   :  { %1667 = vmatpush3.bf16.msra.mxu0 %v1666_v58  ;;  %v127_v33 = vrot.slane %v126_v24, 2  ;;  %v167_v35 = vrot.slane %v166_v25, 4  ;;  %1690 = vmatprep.subr.bf16.mxu1 %v1689_v2  ;;  %v1693_v8 = vpack.c.bf16 %v410_v7, %v407_v6  ;;  %v1695_v11 = vpack.c.bf16 %v409_v10, %v406_v9  ;;  %v422_v19 = vld [vmem:[#allocation5 + $0xb0] sm:$0x3f]  ;;  %v390_v2 = vld [vmem:[%s2341_s4] sm:$0x1] }
  0x4e   :  { %1669 = vmatprep.subr.bf16.mxu0 %v1668_v59  ;;  %v120_v36 = vadd.f32 %v119_v28, %v118_v18  ;;  %v162_v37 = vrot.slane %v161_v29, 2  ;;  %v114_v38 = vrot.slane %v113_v30, 1  ;;  %v156_v39 = vadd.f32 %v155_v31, %v154_v21  ;;  %v419_v18 = vld [vmem:[#allocation5 + $0x98] sm:$0xff]  ;;  %v418_v21 = vld [vmem:[#allocation5 + $0x90] sm:$0xff]  ;;  %v405_v6 = vld [vmem:[#allocation5 + $0x28] sm:$0xff] }
  0x4f   :  { %v128_v41 = vadd.f32 %v127_v33, %v126_v24  ;;  %v168_v42 = vadd.f32 %v167_v35, %v166_v25  ;;  %v1699_v17 = vpack.c.bf16 %v415_v16, %v412_v15  ;;  %v1701_v20 = vpack.c.bf16 %v422_v19, %v419_v18  ;;  %v1749_v28 = vld [vmem:[%s2342_s5 + $0x14] ss:$8 sps:$4 sm:$0xff]   ;;  %v1750_v31 = vld [vmem:[%s2342_s5 + $0x20] ss:$8 sps:$4 sm:$0xff]   ;;  %v1753_v33 = vld [vmem:[%s2342_s5 + $0x30] ss:$8 sps:$4 sm:$0xff]  }
  0x50   :  { %v121_v43 = vrot.slane %v120_v36, 1  ;;  %v163_v44 = vadd.f32 %v162_v37, %v161_v29  ;;  %v157_v46 = vrot.slane %v156_v39, 1  ;;  %v115_v52 = vadd.f32 %v114_v38, %v113_v30  ;;  %v1747_v29 = vld [vmem:[%s2342_s5 + $0x10] ss:$8 sps:$4 sm:$0xff]   ;;  %v1752_v30 = vld [vmem:[%s2342_s5 + $0x24] ss:$8 sps:$4 sm:$0xff]  }
  0x51   :  { %1671 = vmatpush3.bf16.msra.mxu0 %v1670_v13  ;;  %v129_v48 = vrot.slane %v128_v41, 1  ;;  %v169_v49 = vrot.slane %v168_v42, 2  ;;  %v416_v13 = vld [vmem:[#allocation5 + $0x80] sm:$0xff]  ;;  %v1758_v35 = vld [vmem:[%s2342_s5 + $0x44] ss:$8 sps:$4 sm:$0xff]   ;;  %v2157_v4 = vsub.s32 0, %v2057_v23 }
  0x52   :  { %1673 = vmatprep.subr.bf16.mxu0 %v1672_v22  ;;  %v122_v50 = vadd.f32 %v121_v43, %v120_v36  ;;  %v164_v51 = vrot.slane %v163_v44, 1  ;;  %v158_v53 = vadd.f32 %v157_v46, %v156_v39  ;;  %v1697_v14 = vpack.c.bf16 %v416_v13, %v413_v12  ;;  %v421_v22 = vld [vmem:[#allocation5 + $0xa8] sm:$0x3f]  ;;  %v1761_v37 = vld [vmem:[%s2342_s5 + $0x54] ss:$8 sps:$4 sm:$0xff]  }
  0x53   :  { %v170_v54 = vadd.f32 %v169_v49, %v168_v42  ;;  %v130_v56 = vadd.f32 %v129_v48, %v128_v41  ;;  %v1704_v25 = vpack.c.bf16 %v421_v22, %v418_v21  ;;  %v1756_v36 = vld [vmem:[%s2342_s5 + $0x40] ss:$8 sps:$4 sm:$0xff]   ;;  %v1759_v38 = vld [vmem:[%s2342_s5 + $0x50] ss:$8 sps:$4 sm:$0xff]   ;;  %v1764_v39 = vld [vmem:[%s2342_s5 + $0x64] ss:$8 sps:$4 sm:$0xff]  }
  0x54   :  { %v165_v55 = vadd.f32 %v164_v51, %v163_v44  ;;  %v174_v59 = vsel %vm173_vm4, %v115_v52, %v158_v53  ;;  %v1767_v41 = vld [vmem:[%s2342_s5 + $0x74] ss:$8 sps:$4 sm:$0xff]   ;;  %v1765_v42 = vld [vmem:[%s2342_s5 + $0x70] ss:$8 sps:$4 sm:$0xff]   ;;  %v417_v15 = vld [vmem:[#allocation5 + $0x88] sm:$0xff] }
  0x55   :  { %1675 = vmatpush3.bf16.msra.mxu0 %v1674_v32  ;;  %v171_v57 = vrot.slane %v170_v54, 1  ;;  %v1755_v32 = vld [vmem:[%s2342_s5 + $0x34] ss:$8 sps:$4 sm:$0xff]   ;;  %v1768_v21 = vld [vmem:[%s2342_s5 + $0x80] ss:$8 sps:$4 sm:$0xff]  }
  0x56   :  { %1677 = vmatprep.subr.bf16.mxu0 %v1676_v40  ;;  %v175_v58 = vsel %vm173_vm4, %v122_v50, %v165_v55  ;;  %v1762_v40 = vld [vmem:[%s2342_s5 + $0x60] ss:$8 sps:$4 sm:$0xff]   ;;  %v408_v10 = vld [vmem:[#allocation5 + $0x40] sm:$0xff]  ;;  %v423_v18 = vld [vmem:[#allocation5 + $0xb8] sm:$0x3f] }
  0x57   :  { %288 = vmatprep.mubr.f32.mxu0 %v175_v58  ;;  %v172_v60 = vadd.f32 %v171_v57, %v170_v54  ;;  %v1945_v54 = vmov 1966171168   ;;  %v1773_v22 = vld [vmem:[%s2342_s5 + $0x94] ss:$8 sps:$4 sm:$0xff]   ;;  %v1774_v24 = vld [vmem:[%s2342_s5 + $0xa0] ss:$8 sps:$4 sm:$0xff]  }
  0x58   :  { %v374_v55 = vunpack.c.l.s4 %v1945_v54 }
  0x59   :  { %1679 = vmatpush3.bf16.msra.mxu0 %v1678_v47  ;;  %v176_v61 = vsel %vm173_vm4, %v130_v56, %v172_v60 }
  0x5a   :  { %1595 = vmatmul.mubr.msk.f32.vlgmr.msra.gmra.mrb[0].mxu1 %vm216_vm5, %v176_v61  ;;  %923 = vmatprep.subr.bf16.mxu0 %v1746_v27  ;;  %v375_v56 = vunpack.c.0.s8 %v374_v55  ;;  %v371_v61 = vld [vmem:[%s2340_s3] sm:$0x1]  ;;  %v1777_v27 = vld [vmem:[%s2342_s5 + $0xb0] ss:$8 sps:$4 sm:$0xff]  }
  0x5b   :  { %501 = vmatprep.mubr.f32.mxu1 %v1942_v1  ;;  %1692 = vmatpush1.bf16.msra.mxu1 %v1691_v5  ;;  %v402_v5 = vld [vmem:[#allocation5 + $0x10] sm:$0xff] }
  0x5c   :  { %289 = vmatmul.mubr.f32.vlgmr.msra.gmra.mrb[0].mxu0 %v174_v59  ;;  %1694 = vmatprep.subr.bf16.mxu1 %v1693_v8  ;;  %v378_v57 = vsub.s32 %v375_v56, %v2057_v23  ;;  %v1708_v9 = vpack.c.bf16 %v405_v6, %v402_v5 }
  0x5d   :  { %924 = vmatpush1.bf16.msra.mxu0 %v1744_v26  ;;  %v1779_v26 = vld [vmem:[%s2342_s5 + $0xb4] ss:$8 sps:$4 sm:$0xff]  }
  0x5e   :  { %925 = vmatprep.subr.bf16.mxu0 %v1749_v28  ;;  %v1782_v28 = vld [vmem:[%s2342_s5 + $0xc4] ss:$8 sps:$4 sm:$0xff]  }
  0x5f   :  { %1696 = vmatpush1.bf16.msra.mxu1 %v1695_v11  ;;  %v411_v11 = vld [vmem:[#allocation5 + $0x58] sm:$0xff] }
  0x60   :  { %1698 = vmatprep.subr.bf16.mxu1 %v1697_v14  ;;  %v1711_v13 = vpack.c.bf16 %v411_v11, %v408_v10  ;;  %v414_v14 = vld [vmem:[#allocation5 + $0x70] sm:$0xff] }
  0x61   :  { %926 = vmatpush1.bf16.msra.mxu0 %v1747_v29  ;;  %v1714_v16 = vpack.c.bf16 %v417_v15, %v414_v14  ;;  %v1780_v29 = vld [vmem:[%s2342_s5 + $0xc0] ss:$8 sps:$4 sm:$0xff]   ;;  %v1797_v15 = vld [vmem:[%s2342_s5 + $0x114] ss:$8 sps:$4 sm:$0xff]  }
  0x62   :  { %927 = vmatprep.subr.bf16.mxu0 %v1752_v30  ;;  %v1785_v30 = vld [vmem:[%s2342_s5 + $0xd4] ss:$8 sps:$4 sm:$0xff]  }
  0x63   :  { %1700 = vmatpush1.bf16.msra.mxu1 %v1699_v17  ;;  %v420_v17 = vld [vmem:[#allocation5 + $0xa0] sm:$0xff] }
  0x64   :  { %1703 = vmatprep.subr.msk.bf16.mxu1 %vm2092_vm7, %v1701_v20  ;;  %v1717_v19 = vpack.c.bf16 %v423_v18, %v420_v17  ;;  %v1770_v20 = vld [vmem:[%s2342_s5 + $0x84] ss:$8 sps:$4 sm:$0xff]   ;;  %v705_v18 = vld [vmem:[%s2342_s5 + $0x130] sm:$0x77] }
  0x65   :  { %928 = vmatpush1.bf16.msra.mxu0 %v1750_v31  ;;  %v1783_v31 = vld [vmem:[%s2342_s5 + $0xd0] ss:$8 sps:$4 sm:$0xff]   ;;  %v1800_v17 = vld [vmem:[%s2342_s5 + $0x124] ss:$8 sps:$4 sm:$0xff]  }
  0x66   :  { %929 = vmatprep.subr.bf16.mxu0 %v1755_v32  ;;  %v1788_v32 = vld [vmem:[%s2342_s5 + $0xe4] ss:$8 sps:$4 sm:$0xff]  }
  0x67   :  { %1706 = vmatpush1.bf16.msk.msra.mxu1 %vm2092_vm7, %v1704_v25  ;;  %v1776_v25 = vld [vmem:[%s2342_s5 + $0xa4] ss:$8 sps:$4 sm:$0xff]  }
  0x68   :  { %1707 = vmatprep.subr.bf16.mxu1 %v1940_v0 }
  0x69   :  { %930 = vmatpush1.bf16.msra.mxu0 %v1753_v33  ;;  %v1786_v33 = vld [vmem:[%s2342_s5 + $0xe0] ss:$8 sps:$4 sm:$0xff]  }
  0x6a   :  { %931 = vmatprep.subr.bf16.mxu0 %v1758_v35  ;;  %v1791_v35 = vld [vmem:[%s2342_s5 + $0xf4] ss:$8 sps:$4 sm:$0xff]  }
  0x6d   :  { %932 = vmatpush1.bf16.msra.mxu0 %v1756_v36  ;;  %v1789_v36 = vld [vmem:[%s2342_s5 + $0xf0] ss:$8 sps:$4 sm:$0xff]  }
  0x6e   :  { %933 = vmatprep.subr.bf16.mxu0 %v1761_v37  ;;  %v1794_v37 = vld [vmem:[%s2342_s5 + $0x104] ss:$8 sps:$4 sm:$0xff]  }
  0x71   :  { %934 = vmatpush1.bf16.msra.mxu0 %v1759_v38  ;;  %v1803_v38 = vld [vmem:[#allocation7 + $0x40] sm:$0xff]  }
  0x72   :  { %935 = vmatprep.subr.bf16.mxu0 %v1764_v39  ;;  %v1804_v39 = vld [vmem:[#allocation7] sm:$0xff]  }
  0x75   :  { %936 = vmatpush1.bf16.msra.mxu0 %v1762_v40  ;;  %v1805_v40 = vld [vmem:[#allocation7 + $0x48] sm:$0xff]  }
  0x76   :  { %937 = vmatprep.subr.bf16.mxu0 %v1767_v41  ;;  %v1806_v41 = vld [vmem:[#allocation7 + $0x8] sm:$0xff]  }
  0x79   :  { %938 = vmatpush1.bf16.msra.mxu0 %v1765_v42  ;;  %v1807_v42 = vld [vmem:[#allocation7 + $0x50] sm:$0xff]  }
  0x7a   :  { %939 = vmatprep.subr.bf16.mxu0 %v1770_v20 }
  0x7d   :  { %940 = vmatpush1.bf16.msra.mxu0 %v1768_v21  ;;  %v1457_v21 = vcombine.high %v705_v18, %v705_v18 }
  0x7e   :  { %941 = vmatprep.subr.bf16.mxu0 %v1773_v22  ;;  %v1456_v22 = vcombine.low %v705_v18, %v705_v18 }
 0x12d   :  { %v360_v46 = vpop.f32.mrb[0].mxu1 }
 0x12e   :  { %v1596_v48 = vpop.f32.mrb[1].mxu1 }
 0x12f   :  { %v1524_v43 = vpop.f32.mrb[0].mxu0  ;;  %v1812_v48 = vld [vmem:[#allocation7 + $0x20] sm:$0xff]  }
 0x130   :  { %v1525_v44 = vpop.f32.mrb[1].mxu0 }
 0x131   :  { %v1526_v47 = vadd.f32 %v1525_v44, %v1524_v43  ;;  %v1808_v43 = vld [vmem:[#allocation7 + $0x10] sm:$0xff]   ;;  %v1809_v44 = vld [vmem:[#allocation7 + $0x58] sm:$0xff]  }
 0x133   :  { %v361_v49 = vadd.f32 %v1526_v47, %v360_v46  ;;  %v1810_v46 = vld [vmem:[#allocation7 + $0x18] sm:$0xff]   ;;  %v1811_v47 = vld [vmem:[#allocation7 + $0x60] sm:$0xff]  }
 0x135   :  { %v364_v50 = vmul.f32 %v361_v49, %v361_v49 }
 0x137   :  { %v366_v51 = vrot.slane %v364_v50, 7  ;;  %v1814_v50 = vld [vmem:[#allocation7 + $0x28] sm:$0xff]  }
 0x139   :  { %v368_v52 = vsub.f32 %v361_v49, %v366_v51  ;;  %v2222_v51 = vsub.s32 1, %v2057_v23 }
 0x13b   :  { %v369_v53 = vadd.f32 1e-05, %v368_v52 }
 0x13d   :  { %1831 = vrsqrt.f32 %v369_v53 }
 0x147   :  { %v1832_v58 = vpop.eup %1831 }
 0x148   :  { %v379_v59 = vrot.slane %v1832_v58, %v378_v57 }
 0x14a   :  { %v380_v60 = vcombine.high %v379_v59, %v379_v59 }
 0x14c   :  { %v387_v62 = vrot.slane %v380_v60, %v378_v57 }
 0x14e   :  { %v389_v63 = vmul.f32 %v387_v62, %v371_v61 }
 0x150   :  { %v391_v3 = vmul.f32 %v389_v63, %v361_v49  ;;  %v1813_v49 = vld [vmem:[#allocation7 + $0x68] sm:$0xff]  }
 0x152   :  { %v392_v7 = vsub.f32 %v390_v2, %v391_v3 }
 0x154   :  { %v397_v8 = vrot.slane %v392_v7, %v2157_v4 }
 0x156   :  { %v399_v12 = vsel %vm173_vm4, %v389_v63, %v397_v8 }
 0x157   :  { %1415 = vmatmul.mubr.msk.f32.vlgmr.msra.gmra.mrb[2].mxu1 %vm424_vm8, %v399_v12 }
 0x158   :  { %1709 = vmatpush3.bf16.msra.mxu1 %v1708_v9  ;;  %1613 = vmatprep.mubr.msk.f32.mxu1 %vm1941_vm0, %v1942_v1 }
 0x159   :  { %1710 = vmatprep.subr.bf16.mxu1 %v1940_v0 }
 0x15c   :  { %1712 = vmatpush3.bf16.msra.mxu1 %v1711_v13  ;;  %v1792_v13 = vld [vmem:[%s2342_s5 + $0x100] ss:$8 sps:$4 sm:$0xff]  }
 0x15d   :  { %1713 = vmatprep.subr.bf16.mxu1 %v1940_v0 }
 0x160   :  { %1715 = vmatpush3.bf16.msra.mxu1 %v1714_v16  ;;  %v1946_v16 = vmov 0  }
 0x161   :  { %1716 = vmatprep.subr.bf16.mxu1 %v1940_v0  ;;  %v1771_v0 = vld [vmem:[%s2342_s5 + $0x90] ss:$8 sps:$4 sm:$0xff]  }
 0x162   :  { %942 = vmatpush1.bf16.msra.mxu0 %v1771_v0 }
 0x163   :  { %943 = vmatprep.subr.bf16.mxu0 %v1776_v25 }
 0x164   :  { %1719 = vmatpush3.bf16.msk.msra.mxu1 %vm2092_vm7, %v1717_v19  ;;  %v1798_v19 = vld [vmem:[%s2342_s5 + $0x120] ss:$8 sps:$4 sm:$0xff]  }
 0x165   :  { %1544 = vmatprep.subr.bf16.mxu1 %v1803_v38 }
 0x166   :  { %944 = vmatpush1.bf16.msra.mxu0 %v1774_v24  ;;  %v918_v24 = vsel %vm916_vm9, %v1456_v22, 0 }
 0x167   :  { %1614 = vmatmul.mubr.msk.f32.vlgmr.msra.gmra.mrb[4].mxu1 %vm424_vm8, %v399_v12  ;;  %945 = vmatprep.subr.bf16.mxu0 %v1779_v26  ;;  %v1815_v26 = vld [vmem:[#allocation7 + $0x70] sm:$0xff]  }
 0x168   :  { %1545 = vmatpush3.bf16.msra.mxu1 %v1804_v39 }
 0x169   :  { %1546 = vmatprep.subr.bf16.mxu1 %v1805_v40 }
 0x16a   :  { %946 = vmatpush1.bf16.msra.mxu0 %v1777_v27  ;;  %v1816_v27 = vld [vmem:[#allocation7 + $0x30] sm:$0xff]  }
 0x16b   :  { %947 = vmatprep.subr.bf16.mxu0 %v1782_v28  ;;  %v1817_v28 = vld [vmem:[#allocation7 + $0x78] sm:$0xff]  }
 0x16c   :  { %1547 = vmatpush3.bf16.msra.mxu1 %v1806_v41 }
 0x16d   :  { %1548 = vmatprep.subr.bf16.mxu1 %v1807_v42  ;;  %v1819_v42 = vld [vmem:[%s2346_s9] sm:$0xff]  }
 0x16e   :  { %948 = vmatpush1.bf16.msra.mxu0 %v1780_v29  ;;  %v1818_v29 = vld [vmem:[#allocation7 + $0x38] sm:$0xff]  }
 0x16f   :  { %949 = vmatprep.subr.bf16.mxu0 %v1785_v30 }
 0x170   :  { %1549 = vmatpush3.bf16.msra.mxu1 %v1808_v43 }
 0x171   :  { %1550 = vmatprep.subr.bf16.mxu1 %v1809_v44  ;;  %v1821_v44 = vld [vmem:[%s2346_s9 + $0x10] sm:$0xff]  }
 0x172   :  { %950 = vmatpush1.bf16.msra.mxu0 %v1783_v31 }
 0x173   :  { %951 = vmatprep.subr.bf16.mxu0 %v1788_v32 }
 0x174   :  { %1551 = vmatpush3.bf16.msra.mxu1 %v1810_v46  ;;  %v1822_v46 = vld [vmem:[%s2346_s9 + $0x18] sm:$0xff]  }
 0x175   :  { %1552 = vmatprep.subr.bf16.mxu1 %v1811_v47  ;;  %v1823_v47 = vld [vmem:[%s2346_s9 + $0x20] sm:$0xff]  }
 0x176   :  { %952 = vmatpush1.bf16.msra.mxu0 %v1786_v33 }
 0x177   :  { %953 = vmatprep.subr.bf16.mxu0 %v1791_v35 }
 0x178   :  { %1553 = vmatpush3.bf16.msra.mxu1 %v1812_v48  ;;  %v1824_v48 = vld [vmem:[%s2346_s9 + $0x28] sm:$0xff]  }
 0x179   :  { %1554 = vmatprep.subr.bf16.mxu1 %v1813_v49  ;;  %v1825_v49 = vld [vmem:[%s2346_s9 + $0x30] sm:$0xff]  }
 0x17a   :  { %954 = vmatpush1.bf16.msra.mxu0 %v1789_v36 }
 0x17b   :  { %964 = vmatprep.subr.bf16.mxu0 %v1794_v37 }
 0x17c   :  { %1555 = vmatpush3.bf16.msra.mxu1 %v1814_v50  ;;  %v1826_v50 = vld [vmem:[%s2346_s9 + $0x38] sm:$0xff]  }
 0x17d   :  { %1556 = vmatprep.subr.bf16.mxu1 %v1815_v26 }
 0x180   :  { %1557 = vmatpush3.bf16.msra.mxu1 %v1816_v27 }
 0x181   :  { %1558 = vmatprep.subr.bf16.mxu1 %v1817_v28 }
 0x184   :  { %1559 = vmatpush3.bf16.msra.mxu1 %v1818_v29 }
 0x185   :  { %1616 = vmatprep.subr.bf16.mxu1 %v1942_v1 }
 0x22a   :  { %v503_v52 = vpop.f32.mrb[2].mxu1 }
 0x22b   :  { %v581_v53 = vrot.slane %v503_v52, %v2157_v4  ;;  %v614_v54 = vrot.slane %v503_v52, %v2222_v51  ;;  %v505_v55 = vpop.f32.mrb[3].mxu1  ;;  %v1460_v52 = vld [vmem:[%s2345_s8] ss:$0 sm:$0xff] }
 0x22c   :  { %v585_v56 = vrot.slane %v505_v55, %v2157_v4  ;;  %v618_v57 = vrot.slane %v505_v55, %v2222_v51 }
 0x22e   :  { %v593_v58 = vcombine.low %v581_v53, %v585_v56  ;;  %v626_v59 = vcombine.low %v614_v54, %v618_v57 }
 0x230   :  { %v600_v23 = vrot.slane %v593_v58, %v2060_v34  ;;  %v633_v2 = vrot.slane %v626_v59, %v2060_v34  ;;  %v1827_v58 = vld [vmem:[%s2348_s11] sm:$0xff]  }
 0x23a   :  { %v574_v60 = vpop.f32.mrb[4].mxu1 }
 0x23b   :  { %v589_v61 = vrot.slane %v574_v60, %v2157_v4  ;;  %v622_v62 = vrot.slane %v574_v60, %v2222_v51  ;;  %v1615_v63 = vpop.f32.mrb[5].mxu1  ;;  %v1828_v60 = vld [vmem:[%s2348_s11 + $0x8] sm:$0xff]  }
 0x23c   :  { %v1477_v63 = vld [vmem:[%s2347_s10] ss:$0 sm:$0xff]  ;;  %s1947_s10 = smov [#allocation8]  }
 0x23d   :  { %v607_v3 = vrot.slane %v589_v61, %v2060_v34  ;;  %v640_v5 = vrot.slane %v622_v62, %v2060_v34  ;;  %v1829_v61 = vld [vmem:[%s2348_s11 + $0x10] sm:$0xff]   ;;  %v1830_v62 = vld [vmem:[%s2348_s11 + $0x18] sm:$0xff]   ;;  %s1401_s11 = sshll.u32 %s1947_s10, 4  ;;  %s1402_s11 = int_to_ptr.vmem [resolvable:$true] %s1401_s11 }
 0x23e   :  { %p1908_p11 = scmp.lt.s32.totalorder %s1402_s11, %s1402_s11 }
 0x23f   :  { %v608_v6 = vcombine.low %v600_v23, %v607_v3  ;;  %v641_v7 = vcombine.low %v633_v2, %v640_v5 }
 0x241   :  { %v610_v8 = vmul.f32 %v608_v6, %v2066_v45  ;;  %v1795_v45 = vld [vmem:[%s2342_s5 + $0x110] ss:$8 sps:$4 sm:$0xff]  }
 0x243   :  { %v643_v9 = vadd.f32 %v641_v7, %v610_v8 }
 0x245   :  { %v652_v10 = vrot.slane %v643_v9, %v2060_v34  ;;  %v645_v20 = vcombine.high %v643_v9, %v643_v9 }
 0x247   :  { %v660_v11 = vcombine.high %v652_v10, %v652_v10  ;;  %v664_v14 = vpack.c.bf16 %v652_v10, %v652_v10  ;;  %v659_v0 = vrot.slane %v645_v20, %v2060_v34  ;;  %v706_v34 = vld [vmem:[%s2343_s6] sm:$0x3] }
 0x248   :  { %v711_v30 = vrot.slane %v706_v34, %v2157_v4  ;;  %v715_v31 = vrot.slane %v706_v34, %v2222_v51  ;;  %v1820_v4 = vld [vmem:[%s2346_s9 + $0x8] sm:$0xff]  }
 0x249   :  { %v665_v12 = vpack.c.bf16 %v660_v11, %v660_v11  ;;  %v666_v25 = vpack.c.bf16 %v659_v0, %v659_v0 }
 0x24b   :  { %955 = vmatprep.mubr.bf16.mxu0 %v665_v12 }
 0x24c   :  { %956 = vmatmul.mubr.bf16.vlgmr.msra.gmra.mrb[4].mxu0 %v664_v14 }
 0x24d   :  { %965 = vmatpush1.bf16.msra.mxu0 %v1792_v13  ;;  %996 = vmatprep.mubr.bf16.mxu0 %v1946_v16 }
 0x24e   :  { %966 = vmatprep.subr.bf16.mxu0 %v1797_v15 }
 0x251   :  { %967 = vmatpush1.bf16.msra.mxu0 %v1795_v45 }
 0x252   :  { %968 = vmatprep.subr.bf16.mxu0 %v1800_v17 }
 0x255   :  { %969 = vmatpush1.bf16.msra.mxu0 %v1798_v19 }
 0x256   :  { %1458 = vmatprep.subr.msk.bf16.mxu0 %vm916_vm9, %v1457_v21 }
 0x259   :  { %971 = vmatpush1.bf16.msra.mxu0 %v918_v24 }
 0x25c   :  { %1459 = vmatmul.mubr.msk.bf16.vlgmr.msra.gmra.mrb[4].mxu0 %vm216_vm5, %v666_v25 }
 0x32f   :  { %v998_v32 = vpop.f32.mrb[4].mxu0 }
 0x330   :  { %v1720_v33 = vadd.f32 %v998_v32, %v711_v30  ;;  %v1000_v35 = vpop.f32.mrb[5].mxu0 }
 0x331   :  { %v1721_v36 = vadd.f32 %v1000_v35, %v715_v31  ;;  %v1002_v37 = vpop.f32.mrb[6].mxu0 }
 0x332   :  { %v1005_v38 = vmax.f32 %v1720_v33, 0.0  ;;  %v1003_v39 = vpop.f32.mrb[7].mxu0 }
 0x333   :  { %v1006_v40 = vmax.f32 %v1721_v36, 0.0 }
 0x334   :  { %v1007_v43 = vpack.c.bf16 %v1005_v38, %v1005_v38 }
 0x335   :  { %v1008_v41 = vpack.c.bf16 %v1006_v40, %v1006_v40 }
 0x337   :  { %1176 = vmatprep.mubr.bf16.mxu1 %v1008_v41 }
 0x338   :  { %1177 = vmatmul.mubr.bf16.vlgmr.msra.gmra.mrb[8].mxu1 %v1007_v43 }
 0x339   :  { %1617 = vmatpush3.bf16.msra.mxu1 %v1819_v42  ;;  %1632 = vmatprep.mubr.msk.bf16.mxu1 %vm1941_vm0, %v1942_v1 }
 0x33a   :  { %1618 = vmatprep.subr.bf16.mxu1 %v1942_v1 }
 0x33d   :  { %1619 = vmatpush3.bf16.msra.mxu1 %v1820_v4 }
 0x33e   :  { %1620 = vmatprep.subr.bf16.mxu1 %v1942_v1 }
 0x341   :  { %1621 = vmatpush3.bf16.msra.mxu1 %v1821_v44 }
 0x342   :  { %1622 = vmatprep.subr.bf16.mxu1 %v1942_v1 }
 0x345   :  { %1623 = vmatpush3.bf16.msra.mxu1 %v1822_v46 }
 0x346   :  { %1624 = vmatprep.subr.bf16.mxu1 %v1942_v1 }
 0x349   :  { %1625 = vmatpush3.bf16.msra.mxu1 %v1823_v47 }
 0x34a   :  { %1626 = vmatprep.subr.bf16.mxu1 %v1942_v1 }
 0x34d   :  { %1627 = vmatpush3.bf16.msra.mxu1 %v1824_v48 }
 0x34e   :  { %1628 = vmatprep.subr.bf16.mxu1 %v1942_v1 }
 0x351   :  { %1629 = vmatpush3.bf16.msra.mxu1 %v1825_v49 }
 0x352   :  { %1630 = vmatprep.subr.bf16.mxu1 %v1942_v1 }
 0x355   :  { %1631 = vmatpush3.bf16.msra.mxu1 %v1826_v50 }
 0x356   :  { %1636 = vmatprep.subr.bf16.mxu1 %v1942_v1 }
 0x40b   :  { %v1560_v51 = vpop.f32.mrb[8].mxu1 }
 0x40c   :  { %v1561_v53 = vpop.f32.mrb[9].mxu1 }
 0x40d   :  { %v1562_v54 = vadd.f32 %v1561_v53, %v1560_v51  ;;  %v1563_v55 = vpop.f32.mrb[10].mxu1 }
 0x40e   :  { %v1564_v56 = vpop.f32.mrb[11].mxu1 }
 0x40f   :  { %v1179_v57 = vadd.f32 %v1562_v54, %v1460_v52 }
 0x411   :  { %v1184_v59 = vpack.c.bf16 %v1179_v57, %v1179_v57 }
 0x413   :  { %1633 = vmatmul.mubr.bf16.vlgmr.msra.gmra.mrb[12].mxu1 %v1184_v59 }
 0x414   :  { %1637 = vmatpush3.bf16.msra.mxu1 %v1827_v58  ;;  %1644 = vmatprep.mubr.msk.bf16.mxu1 %vm1941_vm0, %v1942_v1 }
 0x415   :  { %1638 = vmatprep.subr.bf16.mxu1 %v1942_v1 }
 0x418   :  { %1639 = vmatpush3.bf16.msra.mxu1 %v1828_v60 }
 0x419   :  { %1640 = vmatprep.subr.bf16.mxu1 %v1942_v1 }
 0x41c   :  { %1641 = vmatpush3.bf16.msra.mxu1 %v1829_v61 }
 0x41d   :  { %1642 = vmatprep.subr.bf16.mxu1 %v1942_v1  ;;  %v1486_v1 = vld [vmem:[%s2349_s12] ss:$0 sm:$0xff]  ;;  %s1903_s12 = scalar_lea.vmem %s1402_s11, 32 }
 0x41e   :  { %p1904_p10 = scmp.ne.s32.totalorder %s1402_s11, %s1903_s12  ;;  %p1909_p12 = scmp.lt.s32.totalorder %s1903_s12, %s1903_s12 }
 0x420   :  { %1643 = vmatpush3.bf16.msra.mxu1 %v1830_v62  ;;  %p1910_p13 = por %p1909_p12, %p1908_p11 }
 0x422   :  { %p1911_p0 = pnand %p1910_p13, %p1904_p10 }
 0x4e6   :  { %v1290_v23 = vpop.f32.mrb[12].mxu1 }
 0x4e7   :  { %v1291_v2 = vadd.f32 %v1477_v63, %v1290_v23  ;;  %v1634_v3 = vpop.f32.mrb[13].mxu1 }
 0x4e8   :  { %v1293_v5 = vpop.f32.mrb[14].mxu1 }
 0x4e9   :  { %v1296_v6 = vmax.f32 %v1291_v2, 0.0  ;;  %v1635_v7 = vpop.f32.mrb[15].mxu1 }
 0x4eb   :  { %v1297_v8 = vpack.c.bf16 %v1296_v6, %v1296_v6 }
 0x4ed   :  { %1645 = vmatmul.mubr.msk.bf16.vlgmr.msra.gmra.mrb[16].mxu1 %vm1337_vm10, %v1297_v8 }
 0x5c0   :  { %v1375_v9 = vpop.f32.mrb[16].mxu1 }
 0x5c1   :  { %v1376_v10 = vadd.f32 %v1486_v1, %v1375_v9  ;;  %v1646_v11 = vpop.f32.mrb[17].mxu1 }
 0x5c2   :  { %v1378_v12 = vpop.f32.mrb[18].mxu1 }
 0x5c3   :  { %v1647_v13 = vpop.f32.mrb[19].mxu1  ;;  %v1382_v14 = vsel %vm1381_vm11, %v1376_v10, -inf }
 0x5c4   :  { %1383 = vmax.xlane.f32.xlu0 %v1382_v14 }
 0x651   :  { %v1384_v15 = vpop.xlane.xlu0 %1383 }
 0x652   :  { %v1385_v45 = vsub.f32 %v1376_v10, %v1384_v15 }
 0x654   :  { %v1386_v16 = vmul.f32 1.442695, %v1385_v45 }
 0x656   :  { %1833 = vpow2.f32 %v1386_v16 }
 0x660   :  { %v1834_v17 = vpop.eup %1833 }
 0x661   :  { %v1388_v18 = vsel %vm1381_vm11, %v1834_v17, 0.0 }
 0x662   :  { %1389 = vadd.xlane.f32.xlu0 %v1388_v18 }
 0x6ef   :  { %v1390_v19 = vpop.xlane.xlu0 %1389 }
 0x6f0   :  { %1835 = vlog2.f32 %v1390_v19 }
 0x6fa   :  { %v1836_v20 = vpop.eup %1835 }
 0x6fb   :  { %v1392_v21 = vmul.f32 0.6931472, %v1836_v20 }
 0x6fd   :  { %v1393_v22 = vsub.f32 %v1385_v45, %v1392_v21 }
 0x6ff   :  { %1394 = vst.msk [vmem:[#allocation8] sm:$0x3] %vm1381_vm11, %v1393_v22 }
 0x700   :  { %1914 = shalt.err (!%p1911_p0)
}
 0x701   :  { %s1915_s14 = scalar_lea.hbm %s2350_s13, 32 }
 0x702   :  { %p1916_p1 = scmp.ne.s32.totalorder %s2350_s13, %s1915_s14  ;;  %p1919_p2 = scmp.lt.u32.totalorder %s1915_s14, %s2350_s13 }
 0x704   :  { %p1921_p3 = pnand %p1919_p2, %p1916_p1 }
 0x706   :  { %1924 = shalt.err (!%p1921_p3)
}
 0x707   :  { %1404 = dma.vmem_to_hbm [thread:$0]  %s1402_s11, 32, %s2350_s13, [#allocation4]  }
 0x708   :  { %1929 = dma.done.wait [#allocation4], 32  }
 0x709   :  { %1930 = vsyncadd [#allocation4], 4294967264 }
 0x70a   :  { %1408 = vsyncpa [#allocation3], 1 }
 0x70b   :  { %1409 = vsyncpa [#allocation6], 1 }
 0x70c   :  { %1410 = vsyncpa [#allocation4], 1 }

</bundles_post_ra>
